<compile_context>
chip_gen: v5e
topology: v5e:2x2
jax: 0.10.0
libtpu: 0.0.40
codegen_flags: <defaults>
</compile_context>

<pallas_src>
import jax
import jax.numpy as jnp
from jax.experimental import pallas as pl
from jax.experimental.pallas import tpu as pltpu


def _downsample_kernel(x_ref, w_ref, o_ref):
    """x_ref: (stride, R_blk, L_blk)   w_ref: (R_blk, stride)   o_ref: (R_blk, L_blk).

    Unrolled multiply-accumulate over the small, static tap axis; accumulate in f32.
    Each tap slice is a dense (sublane=R_blk, lane=L_blk) slab -> pure VPU work.
    """
    s = x_ref.shape[0]
    acc = x_ref[0].astype(jnp.float32) * w_ref[:, 0:1].astype(jnp.float32)
    for k in range(1, s):
        acc = acc + x_ref[k].astype(jnp.float32) * w_ref[:, k : k + 1].astype(jnp.float32)
    o_ref[...] = acc.astype(o_ref.dtype)


def downsample_resolution(x, weight, stride):
    """x: (N, C, L) float32, weight: (C, stride) or (C, 1, stride) -> (N, C, L // stride)."""
    N, C, L = x.shape
    if weight.ndim == 3:  # raw nn.Conv1d weight (C, 1, stride)
        weight = weight.reshape(C, -1)
    assert weight.shape == (C, stride)
    assert stride >= 1
    L_out = L // stride  # kernel_size == stride, no padding
    NC = N * C

    # ---- layout glue (one XLA pass over x): taps -> leading axis, (N, C) flattened ----
    # x_t[k, n*C + c, t] = x[n, c, t*stride + k]
    x_win = x[:, :, : L_out * stride].reshape(N, C, L_out, stride)
    x_t = jnp.transpose(x_win, (3, 0, 1, 2)).reshape(stride, NC, L_out)
    # w_nc[n*C + c, k] = weight[c, k]   (tiny)
    w_nc = jnp.broadcast_to(weight[None, :, :], (N, C, stride)).reshape(NC, stride)

    # ---- tile selection: lane width first (keep >=512 when L_out allows), then rows
    # under an explicit byte budget so double-buffering fits every generation's VMEM. ----
    if L_out <= 128:
        L_blk = L_out  # full dim (legal; tiny-shape case)
    else:
        L_blk = max(c for c in (1024, 512, 256, 128) if c <= L_out)

    X_BLOCK_BUDGET = 2 << 20  # bytes per x block (double-buffered totals stay well
    #                           under v7x's 32 MiB scoped default / 64 MiB physical)
    if NC <= 8:
        R_blk = NC  # full dim (legal)
    else:
        r_cap = max(8, X_BLOCK_BUDGET // (4 * stride * L_blk))
        R_blk = min((r_cap // 8) * 8, (NC // 8) * 8, 512)
        # Make sure the parallel grid has >=2 points so v7x's two TensorCores both
        # get work even when L_out fits in a single lane tile.
        if pl.cdiv(NC, R_blk) < 2 and pl.cdiv(L_out, L_blk) < 2 and R_blk >= 16:
            R_blk = max(8, ((R_blk // 2) // 8) * 8)

    grid = (pl.cdiv(NC, R_blk), pl.cdiv(L_out, L_blk))

    # Explicit VMEM budget: double-buffered x / out / (lane-padded) weight blocks.
    x_blk_bytes = 4 * stride * R_blk * L_blk
    o_blk_bytes = 4 * R_blk * L_blk
    w_blk_bytes = 4 * R_blk * 128  # last dim (stride) pads to 128 lanes
    vmem_limit = 2 * (x_blk_bytes + o_blk_bytes + w_blk_bytes) + (4 << 20)
    vmem_limit = int(min(max(vmem_limit, 16 << 20), 32 << 20))

    out = pl.pallas_call(
        _downsample_kernel,
        out_shape=jax.ShapeDtypeStruct((NC, L_out), x.dtype),
        grid_spec=pltpu.PrefetchScalarGridSpec(
            num_scalar_prefetch=0,
            grid=grid,
            in_specs=[
                pl.BlockSpec((stride, R_blk, L_blk), lambda r, l: (0, r, l)),
                pl.BlockSpec((R_blk, stride), lambda r, l: (r, 0)),
            ],
            out_specs=pl.BlockSpec((R_blk, L_blk), lambda r, l: (r, l)),
        ),
        compiler_params=pltpu.CompilerParams(
            dimension_semantics=("parallel", "parallel"),
            vmem_limit_bytes=vmem_limit,
            allow_input_fusion=[0],  # let XLA fuse the deinterleave producer if it can
        ),
    )(x_t, w_nc)

    return out.reshape(N, C, L_out)


def _reference(x, weight, stride):
    # pure-JAX reference of the depthwise strided conv (PyTorch Conv1d semantics)
    N, C, L = x.shape
    L_out = L // stride
    x_win = x[:, :, : L_out * stride].reshape(N, C, L_out, stride)
    return jnp.einsum("nctk,ck->nct", x_win, weight)


if __name__ == "__main__":
    key = jax.random.PRNGKey(0)

    # Small shapes consistent with the module: batch=2, channels=4, seq_len=16, stride=2
    N, C, L, stride = 2, 4, 16, 2
    kx, kw, kx2, kw2 = jax.random.split(key, 4)
    x = jax.random.normal(kx, (N, C, L), dtype=jnp.float32)
    weight = jax.random.normal(kw, (C, stride), dtype=jnp.float32) * 0.5

    y = downsample_resolution(x, weight, stride)
    y = jax.block_until_ready(y)
    y_ref = _reference(x, weight, stride)
    assert y.shape == (N, C, L // stride), y.shape
    assert jnp.allclose(y, y_ref, atol=1e-5, rtol=1e-5), "mismatch vs reference (small)"

    # Second check exercising the cdiv / ragged-block path (rows and lanes both ragged).
    N2, C2, L2, stride2 = 2, 5, 272, 2  # NC=10, L_out=136
    x2 = jax.random.normal(kx2, (N2, C2, L2), dtype=jnp.float32)
    w2 = jax.random.normal(kw2, (C2, stride2), dtype=jnp.float32) * 0.5
    y2 = jax.block_until_ready(downsample_resolution(x2, w2, stride2))
    y2_ref = _reference(x2, w2, stride2)
    assert y2.shape == (N2, C2, L2 // stride2), y2.shape
    assert jnp.allclose(y2, y2_ref, atol=1e-5, rtol=1e-5), "mismatch vs reference (ragged)"

    print("KERNEL_OK")
</pallas_src>

<mosaic_0001>
module attributes {stable_mosaic.version = 11 : i64} {
  func.func @_downsample_kernel(%arg0: i32, %arg1: i32, %arg2: memref<2x8x8xf32, #tpu.memory_space<vmem>>, %arg3: memref<8x2xf32, #tpu.memory_space<vmem>>, %arg4: memref<8x8xf32, #tpu.memory_space<vmem>>) attributes {dimension_semantics = [#tpu.dimension_semantics<parallel>, #tpu.dimension_semantics<parallel>], iteration_bounds = array<i64: 1, 1>, scalar_prefetch = 0 : i64, scratch_operands = 0 : i64, tpu.core_type = #tpu.core_type<tc>, window_params = [{transform_indices = @transform_0, window_bounds = array<i64: 2, 8, 8>}, {transform_indices = @transform_1, window_bounds = array<i64: 8, 2>}, {transform_indices = @transform_2, window_bounds = array<i64: 8, 8>}]} {
    %c0 = arith.constant 0 : index
    %c0_0 = arith.constant 0 : index
    %c0_1 = arith.constant 0 : index
    %0 = vector.load %arg2[%c0, %c0_0, %c0_1] : memref<2x8x8xf32, #tpu.memory_space<vmem>>, vector<1x8x8xf32>
    %1 = vector.shape_cast %0 : vector<1x8x8xf32> to vector<8x8xf32>
    %c0_2 = arith.constant 0 : index
    %c0_3 = arith.constant 0 : index
    %2 = vector.load %arg3[%c0_2, %c0_3] : memref<8x2xf32, #tpu.memory_space<vmem>>, vector<8x1xf32>
    %3 = vector.broadcast %2 : vector<8x1xf32> to vector<8x8xf32>
    %4 = arith.mulf %1, %3 : vector<8x8xf32>
    %c1 = arith.constant 1 : index
    %c0_4 = arith.constant 0 : index
    %c0_5 = arith.constant 0 : index
    %5 = vector.load %arg2[%c1, %c0_4, %c0_5] : memref<2x8x8xf32, #tpu.memory_space<vmem>>, vector<1x8x8xf32>
    %6 = vector.shape_cast %5 : vector<1x8x8xf32> to vector<8x8xf32>
    %c0_6 = arith.constant 0 : index
    %c1_7 = arith.constant 1 : index
    %7 = vector.load %arg3[%c0_6, %c1_7] : memref<8x2xf32, #tpu.memory_space<vmem>>, vector<8x1xf32>
    %8 = vector.broadcast %7 : vector<8x1xf32> to vector<8x8xf32>
    %9 = arith.mulf %6, %8 : vector<8x8xf32>
    %10 = arith.addf %4, %9 : vector<8x8xf32>
    %c0_8 = arith.constant 0 : index
    %c0_9 = arith.constant 0 : index
    %11 = vector.load %arg4[%c0_8, %c0_9] : memref<8x8xf32, #tpu.memory_space<vmem>>, vector<8x8xf32>
    tpu.vector_store %arg4[%c0_8, %c0_9], %10 {strides = array<i32>} : memref<8x8xf32, #tpu.memory_space<vmem>>, vector<8x8xf32>,
    return
  }
  func.func @transform_0(%arg0: i32, %arg1: i32) -> (i32, i32, i32) {
    %c0_i32 = arith.constant 0 : i32
    %c0_i32_0 = arith.constant 0 : i32
    return %c0_i32, %arg0, %arg1 : i32, i32, i32
  }
  func.func @transform_1(%arg0: i32, %arg1: i32) -> (i32, i32) {
    %c0_i32 = arith.constant 0 : i32
    %c0_i32_0 = arith.constant 0 : i32
    return %arg0, %c0_i32 : i32, i32
  }
  func.func @transform_2(%arg0: i32, %arg1: i32) -> (i32, i32) {
    %c0_i32 = arith.constant 0 : i32
    return %arg0, %arg1 : i32, i32
  }
}

</mosaic_0001>

<bundles_post_ra>
// kernel: tpu_custom_call.1
= control target key start
LH: loop header
LB: loop body
LE: loop exit
PB: predicated region body
PF: predicated region fallthrough
CT: control target
= control target key end

     0   :  { %7 = vsyncpa [#allocation3], 0  ;;  %s153_s0 = inlined_call_operand.hbm [shape: f32[2,8,8], index: 0, kind: input, shape index: {}]   ;;  %s154_s1 = inlined_call_operand.vmem [shape: f32[8,2], index: 1, kind: input, shape index: {}]   ;;  %s155_s2 = inlined_call_operand.hbm [shape: f32[8,8], index: 2, kind: output, shape index: {}]  }
   0x1   :  { %8 = vsyncpa [#allocation4], 0  ;;  %s13_s11 = sshll.u32 %s153_s0, 4  ;;  %s123_s12 = smov [#allocation2]   ;;  %s14_s11 = int_to_ptr.hbm [resolvable:$true] %s13_s11 }
   0x2   :  { %s15_s13 = sshll.u32 %s123_s12, 4  ;;  %s124_s14 = smov 128   ;;  %s16_s13 = int_to_ptr.vmem [resolvable:$true] %s15_s13 }
   0x3   :  { %s125_s15 = smov 8  }
   0x4   :  { %21 = dma.hbm_to_vmem [thread:$0]  %s14_s11, 256, %s16_s13, [#allocation3], %s124_s14, %s124_s14, %s125_s15  }
   0x5   :  { %119 = dma.done.wait [#allocation3], 256  }
   0x6   :  { %120 = vsyncadd [#allocation3], 4294967040  ;;  %v126_v0 = vmov 0   ;;  %v29_v1 = vld [vmem:[%s154_s1] sm:$0xff]  ;;  %v127_v2 = vmov 1   ;;  %v37_v5 = vld [vmem:[#allocation2 + $0x8] sm:$0xff] }
   0x7   :  { %69 = vset.pattern.permute.xlu0 %v126_v0  ;;  %v28_v4 = vld [vmem:[#allocation2] sm:$0xff]  ;;  %s128_s0 = smov [#allocation5]   ;;  %s53_s21 = sshll.u32 %s155_s2, 4  ;;  %vm44_vm0 = vcmask 64512   ;;  %s54_s21 = int_to_ptr.hbm [resolvable:$true] %s53_s21 }
   0x8   :  { %32 = vperm.xlu0 %69, %v29_v1   ;;  %s51_s18 = sshll.u32 %s128_s0, 4  ;;  %s52_s18 = int_to_ptr.vmem [resolvable:$true] %s51_s18 }
  0x10   :  { %70 = vset.pattern.permute.xlu0 %v127_v2 }
  0x11   :  { %39 = vperm.xlu0 %70, %v29_v1  }
  0x7a   :  { %v33_v3 = vpop.permute.xlu0 %32 }
  0x7b   :  { %v35_v7 = vmul.f32 %v33_v3, %v28_v4 }
  0x83   :  { %v40_v6 = vpop.permute.xlu0 %39 }
  0x84   :  { %v42_v8 = vmul.f32 %v40_v6, %v37_v5 }
  0x86   :  { %v43_v9 = vadd.f32 %v42_v8, %v35_v7 }
  0x88   :  { %45 = vst.msk [vmem:[#allocation5] sm:$0xff] %vm44_vm0, %v43_v9 }
  0x89   :  { %56 = dma.vmem_to_hbm [thread:$0]  %s52_s18, 128, %s54_s21, [#allocation4]  }
  0x8a   :  { %121 = dma.done.wait [#allocation4], 128  }
  0x8b   :  { %122 = vsyncadd [#allocation4], 4294967168 }
  0x8c   :  { %61 = vsyncpa [#allocation3], 1 }
  0x8d   :  { %62 = vsyncpa [#allocation4], 1 }

</bundles_post_ra>
